<compile_context>
chip_gen: v7x
topology: tpu7x:2x2x1
jax: 0.10.0
libtpu: 0.0.40
codegen_flags: <defaults>
</compile_context>

<pallas_src>
import math

import jax
import jax.numpy as jnp
from jax import lax
from jax.experimental import pallas as pl
from jax.experimental.pallas import tpu as pltpu


_ROW_ALIGN = 32  # satisfies int8 (32,128) sublane tiling and f32 (8,128)


def _build_temporal_encoding_table(n_inp: int, max_len: int = 7) -> jnp.ndarray:
    """Deterministically build the same table as TemporalEncoding.__init__."""
    assert n_inp % 2 == 0, "sin/cos interleave assumes even n_inp (as in the PyTorch module)"
    position = jnp.arange(0.0, max_len, dtype=jnp.float32)[:, None]           # (max_len, 1)
    div_term = jnp.exp(
        jnp.arange(0, n_inp, 2, dtype=jnp.float32) * -(math.log(10000.0) / n_inp)
    )                                                                          # (n_inp//2,)
    scale = 1.0 / math.sqrt(n_inp)
    sin_part = jnp.sin(position * div_term) * scale                            # even cols
    cos_part = jnp.cos(position * div_term) * scale                            # odd cols
    table = jnp.stack([sin_part, cos_part], axis=-1).reshape(max_len, n_inp)
    return table.astype(jnp.float32)


def _expand_table(table: jnp.ndarray, pack: int, pm_pad: int) -> jnp.ndarray:
    """Block-diagonal expansion for lane packing.

    Row k*max_len + m holds table[m] in column segment [k*n_inp, (k+1)*n_inp);
    everything else (including rows padded up to pm_pad) is zero.
    """
    max_len, n_inp = table.shape
    expanded = jnp.zeros((pm_pad, pack * n_inp), jnp.float32)
    for k in range(pack):
        expanded = expanded.at[
            k * max_len:(k + 1) * max_len, k * n_inp:(k + 1) * n_inp
        ].set(table)
    return expanded


def _round_rows(x: int) -> int:
    return ((x + _ROW_ALIGN - 1) // _ROW_ALIGN) * _ROW_ALIGN


def _temporal_encoding_kernel(idx_ref, table_ref, out_ref):
    """One lane-packed output tile of the embedding lookup.

    idx_ref   : VMEM int8/int32 (TILE_ROWS, P)     -- combined indices t + k*max_len
    table_ref : VMEM f32        (PM_PAD, P*n_inp)  -- block-diagonal expanded table (resident)
    out_ref   : VMEM            (TILE_ROWS, P*n_inp) -- lane-dense packed output tile
    """
    tile_rows, pack = idx_ref.shape
    pm_pad = table_ref.shape[0]

    idx = idx_ref[...].astype(jnp.int32)                               # (TILE_ROWS, P)
    col = lax.broadcasted_iota(jnp.int32, (tile_rows, pm_pad), 1)

    # Accumulate the P compares as bool and cast to f32 once (cheaper on VPU).
    hits = col == idx[:, 0:1]
    for k in range(1, pack):                                           # static unroll, P small
        hits = hits | (col == idx[:, k:k + 1])
    onehot = hits.astype(jnp.float32)

    # One MXU matmul gathers TILE_ROWS * P embedding rows at once.
    out_ref[...] = jnp.dot(
        onehot, table_ref[...], preferred_element_type=jnp.float32
    ).astype(out_ref.dtype)


def temporal_encoding_forward(
    t: jnp.ndarray,
    emb_table: jnp.ndarray,
    *,
    tile_rows: int = 4096,
    min_pallas_elements: int = 16384,
    out_dtype=jnp.float32,
) -> jnp.ndarray:
    """Pallas implementation of TemporalEncoding.forward(t) == emb_table[t]."""
    orig_shape = t.shape
    max_len, n_inp = emb_table.shape

    # Tiny problems: fixed kernel-call overhead dwarfs the data moved, and a
    # plain XLA gather on a 7 x n_inp table fuses with neighbors for free.
    if t.size * n_inp < min_pallas_elements:
        return jnp.take(emb_table, t, axis=0).astype(out_dtype)

    # nn.Embedding raises on out-of-range indices; we clamp instead (documented deviation).
    t_flat = jnp.clip(t.reshape(-1).astype(jnp.int32), 0, max_len - 1)
    n = t_flat.shape[0]

    # Lane-packing factor: pack P consecutive embedding rows per output row so
    # the store lane width is always a multiple of 128 (full-width vst).
    if n_inp % 128 == 0:
        pack = 1
    else:
        pack = math.lcm(n_inp, 128) // n_inp
    lane_width = pack * n_inp

    # --- tile sizing -------------------------------------------------------
    rows_needed = -(-n // pack)
    tile_rows = max(_ROW_ALIGN, min(tile_rows, _round_rows(rows_needed)))
    tile_rows = _round_rows(tile_rows)
    # v7x megacore: if the whole problem fits in a single tile but there is
    # plenty of work, split into >= 2 grid steps so both TensorCores get a share.
    if rows_needed >= 2048 and _round_rows(rows_needed) <= tile_rows:
        tile_rows = _round_rows(-(-rows_needed // 2))
    rows_pad = (-(-rows_needed // tile_rows)) * tile_rows
    n_pad = rows_pad * pack

    # --- index prep (combined indices, narrow dtype) -----------------------
    if n_pad == n:
        t_padded = t_flat
    else:
        # Padded slots get index 0 -> table[0]; they are sliced off below.
        t_padded = jnp.zeros((n_pad,), jnp.int32).at[:n].set(t_flat)
    offsets = (jnp.arange(pack, dtype=jnp.int32) * max_len)[None, :]       # (1, P)
    combined = t_padded.reshape(rows_pad, pack) + offsets                  # (rows_pad, P)
    idx_dtype = jnp.int8 if pack * max_len <= 127 else jnp.int32
    combined = combined.astype(idx_dtype)

    # --- table prep ---------------------------------------------------------
    pm_pad = ((pack * max_len + 7) // 8) * 8        # sublane-align contraction dim
    table_exp = _expand_table(emb_table.astype(jnp.float32), pack, pm_pad)

    # --- VMEM budget (explicit limit only if the default 16 MiB on v5e is tight)
    out_itemsize = jnp.dtype(out_dtype).itemsize
    idx_itemsize = jnp.dtype(idx_dtype).itemsize
    est_bytes = (
        2 * tile_rows * lane_width * out_itemsize
        + 2 * tile_rows * max(pack, 128) * idx_itemsize   # index tile is lane-padded to 128
        + 2 * pm_pad * lane_width * 4
    )
    cp_kwargs = dict(dimension_semantics=("parallel",))
    if est_bytes > (12 << 20):
        cp_kwargs["vmem_limit_bytes"] = min(int(est_bytes * 3 // 2), 48 << 20)

    grid = (rows_pad // tile_rows,)
    out_packed = pl.pallas_call(
        _temporal_encoding_kernel,
        out_shape=jax.ShapeDtypeStruct((rows_pad, lane_width), out_dtype),
        grid_spec=pltpu.PrefetchScalarGridSpec(
            num_scalar_prefetch=0,
            grid=grid,
            in_specs=[
                pl.BlockSpec((tile_rows, pack), lambda i: (i, 0)),        # combined index tile
                pl.BlockSpec((pm_pad, lane_width), lambda i: (0, 0)),     # resident table
            ],
            out_specs=pl.BlockSpec((tile_rows, lane_width), lambda i: (i, 0)),
        ),
        compiler_params=pltpu.CompilerParams(**cp_kwargs),
    )(combined, table_exp)

    # Undo lane packing (contiguous row-major reshape, free). Only slice when
    # padding was actually added (avoids an extra HBM round trip otherwise).
    out_flat = out_packed.reshape(rows_pad * pack, n_inp)
    if rows_pad * pack != n:
        out_flat = out_flat[:n]
    return out_flat.reshape(*orig_shape, n_inp)


if __name__ == "__main__":
    n_inp = 32
    max_len = 7

    emb_table = _build_temporal_encoding_table(n_inp, max_len)

    # Small shape consistent with the module (batch=2, seq=8); force the Pallas
    # path (production default routes tiny inputs through plain XLA gather).
    key = jax.random.PRNGKey(0)
    t_small = jax.random.randint(key, (2, 8), minval=0, maxval=max_len, dtype=jnp.int32)
    out_small = jax.block_until_ready(
        temporal_encoding_forward(t_small, emb_table, min_pallas_elements=0)
    )
    ref_small = jnp.take(emb_table, t_small, axis=0)
    assert out_small.shape == (2, 8, n_inp)
    err_small = float(jnp.max(jnp.abs(out_small - ref_small)))
    assert err_small < 1e-4, f"small-case max abs error {err_small}"

    # Medium shape: exercises the multi-step grid (megacore split) and the
    # no-padding / no-slice fast path.
    t_med = jax.random.randint(
        jax.random.PRNGKey(1), (8, 1024), minval=0, maxval=max_len, dtype=jnp.int32
    )
    out_med = jax.block_until_ready(temporal_encoding_forward(t_med, emb_table))
    ref_med = jnp.take(emb_table, t_med, axis=0)
    assert out_med.shape == (8, 1024, n_inp)
    err_med = float(jnp.max(jnp.abs(out_med - ref_med)))
    assert err_med < 1e-4, f"medium-case max abs error {err_med}"

    print("KERNEL_OK")
</pallas_src>

<mosaic_0001>
module attributes {stable_mosaic.version = 11 : i64} {
  func.func @_temporal_encoding_kernel(%arg0: i32, %arg1: memref<32x4xi8, #tpu.memory_space<vmem>>, %arg2: memref<32x128xf32, #tpu.memory_space<vmem>>, %arg3: memref<32x128xf32, #tpu.memory_space<vmem>>) attributes {dimension_semantics = [#tpu.dimension_semantics<parallel>], iteration_bounds = array<i64: 1>, scalar_prefetch = 0 : i64, scratch_operands = 0 : i64, tpu.core_type = #tpu.core_type<tc>, window_params = [{transform_indices = @transform_0, window_bounds = array<i64: 32, 4>}, {pipeline_mode = #tpu.pipeline_mode<synchronous>, transform_indices = @transform_1, window_bounds = array<i64: 32, 128>}, {transform_indices = @transform_2, window_bounds = array<i64: 32, 128>}]} {
    %c0 = arith.constant 0 : index
    %c0_0 = arith.constant 0 : index
    %0 = vector.load %arg1[%c0, %c0_0] : memref<32x4xi8, #tpu.memory_space<vmem>>, vector<32x4xi8>
    %1 = arith.extsi %0 : vector<32x4xi8> to vector<32x4xi32>
    %2 = tpu.iota {dimensions = array<i32: 1>} : vector<32x32xi32>
    %3 = vector.extract_strided_slice %1 {offsets = [0, 0], sizes = [32, 1], strides = [1, 1]} : vector<32x4xi32> to vector<32x1xi32>
    %4 = vector.broadcast %3 : vector<32x1xi32> to vector<32x32xi32>
    %5 = arith.cmpi eq, %2, %4 : vector<32x32xi32>
    %6 = vector.extract_strided_slice %1 {offsets = [0, 1], sizes = [32, 1], strides = [1, 1]} : vector<32x4xi32> to vector<32x1xi32>
    %7 = vector.broadcast %6 : vector<32x1xi32> to vector<32x32xi32>
    %8 = arith.cmpi eq, %2, %7 : vector<32x32xi32>
    %9 = arith.ori %5, %8 : vector<32x32xi1>
    %10 = vector.extract_strided_slice %1 {offsets = [0, 2], sizes = [32, 1], strides = [1, 1]} : vector<32x4xi32> to vector<32x1xi32>
    %11 = vector.broadcast %10 : vector<32x1xi32> to vector<32x32xi32>
    %12 = arith.cmpi eq, %2, %11 : vector<32x32xi32>
    %13 = arith.ori %9, %12 : vector<32x32xi1>
    %14 = vector.extract_strided_slice %1 {offsets = [0, 3], sizes = [32, 1], strides = [1, 1]} : vector<32x4xi32> to vector<32x1xi32>
    %15 = vector.broadcast %14 : vector<32x1xi32> to vector<32x32xi32>
    %16 = arith.cmpi eq, %2, %15 : vector<32x32xi32>
    %17 = arith.ori %13, %16 : vector<32x32xi1>
    %18 = arith.extui %17 : vector<32x32xi1> to vector<32x32xi32>
    %19 = arith.sitofp %18 : vector<32x32xi32> to vector<32x32xf32>
    %c0_1 = arith.constant 0 : index
    %c0_2 = arith.constant 0 : index
    %20 = vector.load %arg2[%c0_1, %c0_2] : memref<32x128xf32, #tpu.memory_space<vmem>>, vector<32x128xf32>
    %cst = arith.constant dense<0.000000e+00> : vector<32x128xf32>
    %21 = tpu.matmul %19, %20, %cst {dimension_numbers = #tpu.dot_dimension_numbers<[1], [0], [0], [1], [0, 0, 1, 1], [], []>} : vector<32x32xf32>, vector<32x128xf32>, vector<32x128xf32> -> vector<32x128xf32>
    %c0_3 = arith.constant 0 : index
    %c0_4 = arith.constant 0 : index
    %22 = vector.load %arg3[%c0_3, %c0_4] : memref<32x128xf32, #tpu.memory_space<vmem>>, vector<32x128xf32>
    tpu.vector_store %arg3[%c0_3, %c0_4], %21 {strides = array<i32>} : memref<32x128xf32, #tpu.memory_space<vmem>>, vector<32x128xf32>,
    return
  }
  func.func @transform_0(%arg0: i32) -> (i32, i32) {
    %c0_i32 = arith.constant 0 : i32
    %c0_i32_0 = arith.constant 0 : i32
    return %arg0, %c0_i32 : i32, i32
  }
  func.func @transform_1(%arg0: i32) -> (i32, i32) {
    %c0_i32 = arith.constant 0 : i32
    %c0_i32_0 = arith.constant 0 : i32
    %c0_i32_1 = arith.constant 0 : i32
    return %c0_i32, %c0_i32_0 : i32, i32
  }
  func.func @transform_2(%arg0: i32) -> (i32, i32) {
    %c0_i32 = arith.constant 0 : i32
    %c0_i32_0 = arith.constant 0 : i32
    return %arg0, %c0_i32 : i32, i32
  }
}

</mosaic_0001>

<bundles_post_ra>
// kernel: tpu_custom_call.1
= control target key start
LH: loop header
LB: loop body
LE: loop exit
PB: predicated region body
PF: predicated region fallthrough
CT: control target
= control target key end

     0   :  { %7 = vsyncpa [#allocation3], 0  ;;  %s421_s0 = inlined_call_operand.vmem [shape: s8[32,4], index: 0, kind: input, shape index: {}]   ;;  %s422_s1 = inlined_call_operand.hbm [shape: f32[32,128], index: 1, kind: input, shape index: {}]   ;;  %s423_s2 = inlined_call_operand.hbm [shape: f32[32,128], index: 2, kind: output, shape index: {}]  }
   0x1   :  { %8 = vsyncpa [#allocation4], 0  ;;  %s360_s9 = smov [#allocation2]   ;;  %s312_s13 = scalar_lea.hbm %s422_s1, 512 }
   0x2   :  { %s16_s10 = sshll.u32 %s360_s9, 4  ;;  %p313_p0 = scmp.ne.s32.totalorder %s422_s1, %s312_s13  ;;  %s17_s10 = int_to_ptr.vmem [resolvable:$true] %s16_s10 }
   0x3   :  { %p316_p1 = scmp.lt.u32.totalorder %s312_s13, %s422_s1 }
   0x5   :  { %p318_p2 = pnand %p316_p1, %p313_p0 }
   0x7   :  { %321 = shalt.err (!%p318_p2)
}
   0x8   :  { %s322_s18 = scalar_lea.vmem %s17_s10, 512  ;;  %p327_p4 = scmp.lt.s32.totalorder %s17_s10, %s17_s10 }
   0x9   :  { %p323_p3 = scmp.ne.s32.totalorder %s17_s10, %s322_s18  ;;  %p328_p5 = scmp.lt.s32.totalorder %s322_s18, %s322_s18 }
   0xb   :  { %p329_p6 = por %p328_p5, %p327_p4 }
   0xd   :  { %p330_p7 = pnand %p329_p6, %p323_p3 }
   0xf   :  { %333 = shalt.err (!%p330_p7)
}
  0x10   :  { %s361_s19 = smov 128   ;;  %s362_s20 = smov 8  }
  0x11   :  { %22 = dma.hbm_to_vmem [thread:$0]  %s422_s1, 512, %s17_s10, [#allocation3], %s361_s19, %s361_s19, %s362_s20  }
  0x12   :  { %356 = dma.done.wait [#allocation3], 512  }
  0x13   :  { %357 = vsyncadd [#allocation3], 4294966784  ;;  %v363_v0 = vmov 1   ;;  %v364_v1 = vmov 0   ;;  %v252_v2 = vld [vmem:[%s421_s0] sm:$0xff]   ;;  %v365_v7 = vmov 2   ;;  %v34_v21 = vlaneseq }
  0x14   :  { %304 = vset.pattern.permute.xlu1 %v363_v0  ;;  %303 = vset.pattern.permute.xlu0 %v364_v1  ;;  %v253_v3 = vunpack.c.0.s8 %v252_v2  ;;  %v257_v4 = vunpack.c.2.s8 %v252_v2  ;;  %v254_v5 = vunpack.c.1.s8 %v252_v2  ;;  %v258_v6 = vunpack.c.3.s8 %v252_v2  ;;  %v120_v9 = vld [vmem:[#allocation2] sm:$0xff]  ;;  %v121_v10 = vld [vmem:[#allocation2 + $0x8] sm:$0xff]  ;;  %v122_v12 = vld [vmem:[#allocation2 + $0x10] sm:$0xff]  ;;  %s368_s0 = smov [#allocation5]  }
  0x15   :  { %v366_v8 = vmov 3   ;;  %v281_v11 = vpack.c.bf16 %v121_v10, %v120_v9  ;;  %v123_v13 = vld [vmem:[#allocation2 + $0x18] sm:$0xff]  ;;  %v35_v24 = vand.u32 127, %v34_v21  ;;  %vm424_vm6 = vcmask 261120   ;;  %s231_s1 = sshll.u32 %s368_s0, 4  ;;  %s232_s1 = int_to_ptr.vmem [resolvable:$true] %s231_s1 }
  0x16   :  { %53 = vperm.xlu1 %304, %v253_v3   ;;  %37 = vperm.xlu0 %303, %v253_v3   ;;  %v285_v14 = vpack.c.bf16 %v123_v13, %v122_v12  ;;  %v367_v30 = vmov 0.0   ;;  %s334_s25 = scalar_lea.vmem %s232_s1, 512  ;;  %p339_p9 = scmp.lt.s32.totalorder %s232_s1, %s232_s1 }
  0x17   :  { %289 = vmatprep.subr.bf16.mxu1 %v281_v11  ;;  %282 = vmatprep.subr.bf16.mxu0 %v281_v11  ;;  %p335_p8 = scmp.ne.s32.totalorder %s232_s1, %s334_s25  ;;  %p340_p10 = scmp.lt.s32.totalorder %s334_s25, %s334_s25 }
  0x18   :  { %291 = vmatpush3.bf16.msra.mxu1 %v281_v11  ;;  %284 = vmatpush3.bf16.msra.mxu0 %v281_v11 }
  0x19   :  { %290 = vmatprep.subr.bf16.mxu1 %v285_v14  ;;  %286 = vmatprep.subr.bf16.mxu0 %v285_v14  ;;  %p341_p11 = por %p340_p10, %p339_p9 }
  0x1a   :  { %59 = vperm.xlu1 %304, %v257_v4   ;;  %43 = vperm.xlu0 %303, %v257_v4  }
  0x1b   :  { %p342_p12 = pnand %p341_p11, %p335_p8 }
  0x1c   :  { %292 = vmatpush3.bf16.msra.mxu1 %v285_v14  ;;  %288 = vmatpush3.bf16.msra.mxu0 %v285_v14 }
  0x1e   :  { %305 = vset.pattern.permute.xlu1 %v364_v1  ;;  %40 = vperm.xlu0 %303, %v254_v5  }
  0x1f   :  { %46 = vperm.xlu1 %305, %v258_v6  }
  0x22   :  { %306 = vset.pattern.permute.xlu0 %v363_v0 }
  0x23   :  { %307 = vset.pattern.permute.xlu1 %v363_v0  ;;  %56 = vperm.xlu0 %306, %v254_v5  }
  0x24   :  { %62 = vperm.xlu1 %307, %v258_v6  }
  0x27   :  { %309 = vset.pattern.permute.xlu0 %v365_v7 }
  0x28   :  { %308 = vset.pattern.permute.xlu1 %v365_v7  ;;  %79 = vperm.xlu0 %309, %v257_v4  }
  0x29   :  { %73 = vperm.xlu1 %308, %v253_v3  }
  0x2c   :  { %310 = vset.pattern.permute.xlu0 %v366_v8 }
  0x2d   :  { %76 = vperm.xlu1 %308, %v254_v5   ;;  %93 = vperm.xlu0 %310, %v253_v3  }
  0x31   :  { %82 = vperm.xlu1 %308, %v258_v6   ;;  %102 = vperm.xlu0 %310, %v258_v6  }
  0x35   :  { %311 = vset.pattern.permute.xlu1 %v366_v8 }
  0x36   :  { %99 = vperm.xlu1 %311, %v257_v4  }
  0x3a   :  { %96 = vperm.xlu1 %311, %v254_v5  }
  0x95   :  { %v54_v15 = vpop.permute.xlu1 %53  ;;  %v38_v16 = vpop.permute.xlu0 %37 }
  0x96   :  { %vm64_vm0 = vcmp.eq.s32.totalorder %v35_v24, %v54_v15  ;;  %vm48_vm1 = vcmp.eq.s32.totalorder %v35_v24, %v38_v16 }
  0x97   :  { %vm68_vm3 = vmor %vm48_vm1, %vm64_vm0 }
  0x99   :  { %v60_v17 = vpop.permute.xlu1 %59  ;;  %v44_v18 = vpop.permute.xlu0 %43 }
  0x9a   :  { %vm66_vm9 = vcmp.eq.s32.totalorder %v35_v24, %v60_v17  ;;  %vm50_vm10 = vcmp.eq.s32.totalorder %v35_v24, %v44_v18 }
  0x9b   :  { %vm70_vm1 = vmor %vm50_vm10, %vm66_vm9 }
  0x9d   :  { %v41_v19 = vpop.permute.xlu0 %40 }
  0x9e   :  { %v47_v20 = vpop.permute.xlu1 %46 }
  0x9f   :  { %vm51_vm11 = vcmp.eq.s32.totalorder %v35_v24, %v47_v20 }
  0xa2   :  { %v57_v22 = vpop.permute.xlu0 %56 }
  0xa3   :  { %v63_v23 = vpop.permute.xlu1 %62 }
  0xa4   :  { %vm67_vm7 = vcmp.eq.s32.totalorder %v35_v24, %v63_v23 }
  0xa5   :  { %vm71_vm13 = vmor %vm51_vm11, %vm67_vm7  ;;  %vm49_vm7 = vcmp.eq.s32.totalorder %v35_v24, %v41_v19 }
  0xa7   :  { %v80_v25 = vpop.permute.xlu0 %79 }
  0xa8   :  { %v74_v26 = vpop.permute.xlu1 %73  ;;  %vm86_vm14 = vcmp.eq.s32.totalorder %v35_v24, %v80_v25 }
  0xa9   :  { %vm84_vm2 = vcmp.eq.s32.totalorder %v35_v24, %v74_v26 }
  0xaa   :  { %vm88_vm5 = vmor %vm68_vm3, %vm84_vm2  ;;  %vm65_vm3 = vcmp.eq.s32.totalorder %v35_v24, %v57_v22 }
  0xab   :  { %vm90_vm2 = vmor %vm70_vm1, %vm86_vm14 }
  0xac   :  { %v77_v27 = vpop.permute.xlu1 %76  ;;  %v94_v28 = vpop.permute.xlu0 %93  ;;  %vm69_vm11 = vmor %vm49_vm7, %vm65_vm3 }
  0xad   :  { %vm104_vm4 = vcmp.eq.s32.totalorder %v35_v24, %v94_v28 }
  0xae   :  { %vm108_vm8 = vmor %vm88_vm5, %vm104_vm4 }
  0xaf   :  { %v243_v31 = vsel %vm108_vm8, 1.0, %v367_v30  ;;  %vm85_vm8 = vcmp.eq.s32.totalorder %v35_v24, %v77_v27 }
  0xb0   :  { %v83_v29 = vpop.permute.xlu1 %82  ;;  %v103_v32 = vpop.permute.xlu0 %102  ;;  %275 = vmatprep.mubr.msk.f32.mxu0 %vm424_vm6, %v243_v31 }
  0xb1   :  { %vm87_vm12 = vcmp.eq.s32.totalorder %v35_v24, %v83_v29  ;;  %vm107_vm0 = vcmp.eq.s32.totalorder %v35_v24, %v103_v32 }
  0xb2   :  { %vm91_vm15 = vmor %vm71_vm13, %vm87_vm12  ;;  %vm425_vm12 = vcmask 261120  }
  0xb3   :  { %vm111_vm4 = vmor %vm91_vm15, %vm107_vm0 }
  0xb4   :  { %v246_v35 = vsel %vm111_vm4, 1.0, %v367_v30  ;;  %vm89_vm13 = vmor %vm69_vm11, %vm85_vm8 }
  0xb5   :  { %v100_v33 = vpop.permute.xlu1 %99  ;;  %vm426_vm10 = vmmov %vm425_vm12 }
  0xb6   :  { %vm106_vm5 = vcmp.eq.s32.totalorder %v35_v24, %v100_v33  ;;  %vm427_vm14 = vmmov %vm426_vm10 }
  0xb7   :  { %vm110_vm6 = vmor %vm90_vm2, %vm106_vm5 }
  0xb8   :  { %v245_v34 = vsel %vm110_vm6, 1.0, %v367_v30 }
  0xb9   :  { %v97_v36 = vpop.permute.xlu1 %96  ;;  %278 = vmatprep.mubr.msk.f32.mxu1 %vm425_vm12, %v245_v34 }
  0xba   :  { %vm105_vm9 = vcmp.eq.s32.totalorder %v35_v24, %v97_v36  ;;  %279 = vmatmul.mubr.msk.f32.vlgmr.msra.gmra.mrb[0].mxu1 %vm426_vm10, %v246_v35 }
  0xbb   :  { %vm109_vm1 = vmor %vm89_vm13, %vm105_vm9 }
  0xbc   :  { %v244_v37 = vsel %vm109_vm1, 1.0, %v367_v30 }
  0xbd   :  { %276 = vmatmul.mubr.msk.f32.vlgmr.msra.gmra.mrb[0].mxu0 %vm427_vm14, %v244_v37 }
 0x18d   :  { %v280_v38 = vpop.f32.mrb[0].mxu1 }
 0x18e   :  { %225 = vst [vmem:[#allocation5 + $0x18] sm:$0xff] %v280_v38  ;;  %v213_v39 = vpop.f32.mrb[1].mxu1 }
 0x18f   :  { %224 = vst [vmem:[#allocation5 + $0x10] sm:$0xff] %v213_v39 }
 0x190   :  { %v277_v40 = vpop.f32.mrb[0].mxu0 }
 0x191   :  { %223 = vst [vmem:[#allocation5 + $0x8] sm:$0xff] %v277_v40  ;;  %v203_v41 = vpop.f32.mrb[1].mxu0 }
 0x192   :  { %222 = vst [vmem:[#allocation5] sm:$0xff] %v203_v41 }
 0x193   :  { %345 = shalt.err (!%p342_p12)
}
 0x194   :  { %s346_s28 = scalar_lea.hbm %s423_s2, 512 }
 0x195   :  { %p347_p13 = scmp.ne.s32.totalorder %s423_s2, %s346_s28  ;;  %p350_p0 = scmp.lt.u32.totalorder %s346_s28, %s423_s2 }
 0x197   :  { %p352_p1 = pnand %p350_p0, %p347_p13 }
 0x199   :  { %355 = shalt.err (!%p352_p1)
}
 0x19a   :  { %237 = dma.vmem_to_hbm [thread:$0]  %s232_s1, 512, %s423_s2, [#allocation4], %s361_s19, %s361_s19, %s362_s20  }
 0x19b   :  { %358 = dma.done.wait [#allocation4], 512  }
 0x19c   :  { %359 = vsyncadd [#allocation4], 4294966784 }
 0x19d   :  { %241 = vsyncpa [#allocation3], 1 }
 0x19e   :  { %242 = vsyncpa [#allocation4], 1 }

</bundles_post_ra>
